<compile_context>
chip_gen: v5e
topology: v5e:2x2
jax: 0.10.0
libtpu: 0.0.40
codegen_flags: <defaults>
</compile_context>

<pallas_src>
import jax
import jax.numpy as jnp
from jax.experimental import pallas as pl
from jax.experimental.pallas import tpu as pltpu


def _round_up(x, m):
    return ((x + m - 1) // m) * m


# ---------------- stage 1: support = X @ W ----------------
def _support_kernel(x_ref, w_ref, o_ref):
    o_ref[...] = jnp.dot(
        x_ref[...], w_ref[...], preferred_element_type=jnp.float32
    ).astype(o_ref.dtype)


# ------------ stage 2: out = A @ support + bias ------------
def _aggregate_kernel(a_ref, s_ref, b_ref, o_ref, acc_ref):
    k = pl.program_id(1)

    @pl.when(k == 0)
    def _():
        acc_ref[...] = jnp.zeros_like(acc_ref)

    acc_ref[...] += jnp.dot(
        a_ref[...], s_ref[...], preferred_element_type=jnp.float32
    )

    @pl.when(k == pl.num_programs(1) - 1)
    def _():
        o_ref[...] = (acc_ref[...] + b_ref[...]).astype(o_ref.dtype)


def graph_convolution(x, weight, adjacency, bias=None):
    """Pallas GCN layer: (A @ (X @ W)) + b.

    x:         (N, Fin)
    weight:    (Fin, Fout)
    adjacency: (N, N)   (dense stand-in for torch.sparse.mm)
    bias:      (Fout,) or None
    returns    (N, Fout) float32
    """
    x = jnp.asarray(x)
    weight = jnp.asarray(weight)
    adjacency = jnp.asarray(adjacency)

    n, fin = x.shape
    fin_w, fout = weight.shape
    assert fin == fin_w, "weight shape mismatch"
    assert adjacency.shape == (n, n), "adjacency must be (N, N)"

    compute_dtype = jnp.bfloat16  # streamed MXU operands; accumulation is f32

    # Lane-dense feature (output-column) padding.
    fout_p = _round_up(fout, 128)

    # Row / reduction tile sizes for the (N, N) aggregation matmul.
    tm = 256 if n >= 256 else _round_up(n, 8)
    tk = 512 if n >= 512 else _round_up(n, 128)
    n_rows_p = _round_up(n, tm)   # padded output-row extent
    n_cols_p = _round_up(n, tk)   # padded reduction extent

    # Zero-pad operands to tile multiples (zero rows/cols contribute nothing).
    x_p = jnp.zeros((n_cols_p, fin), compute_dtype).at[:n, :].set(
        x.astype(compute_dtype))
    w_p = jnp.zeros((fin, fout_p), compute_dtype).at[:, :fout].set(
        weight.astype(compute_dtype))
    a_p = jnp.zeros((n_rows_p, n_cols_p), compute_dtype).at[:n, :n].set(
        adjacency.astype(compute_dtype))
    if bias is None:
        b_p = jnp.zeros((1, fout_p), jnp.float32)
    else:
        b_p = jnp.zeros((1, fout_p), jnp.float32).at[0, :fout].set(
            jnp.asarray(bias).astype(jnp.float32))

    # ---- stage 1: support = X @ W (bf16 out, lane-dense, row-tiled) ----
    ts = next(t for t in (512, 256, 128) if n_cols_p % t == 0)
    support = pl.pallas_call(
        _support_kernel,
        out_shape=jax.ShapeDtypeStruct((n_cols_p, fout_p), compute_dtype),
        grid_spec=pltpu.PrefetchScalarGridSpec(
            num_scalar_prefetch=0,
            grid=(n_cols_p // ts,),
            in_specs=[
                pl.BlockSpec((ts, fin), lambda i: (i, 0)),      # X rows
                pl.BlockSpec((fin, fout_p), lambda i: (0, 0)),  # W (resident)
            ],
            out_specs=pl.BlockSpec((ts, fout_p), lambda i: (i, 0)),
        ),
        compiler_params=pltpu.CompilerParams(
            dimension_semantics=("parallel",)),
        cost_estimate=pl.CostEstimate(
            flops=2 * n_cols_p * fin * fout_p,
            transcendentals=0,
            bytes_accessed=(n_cols_p * fin * 2 + fin * fout_p * 2
                            + n_cols_p * fout_p * 2),
        ),
    )(x_p, w_p)

    # ---- stage 2: out = A @ support + bias (rows x reduction grid) ----
    grid = (n_rows_p // tm, n_cols_p // tk)
    out_p = pl.pallas_call(
        _aggregate_kernel,
        out_shape=jax.ShapeDtypeStruct((n_rows_p, fout_p), jnp.float32),
        grid_spec=pltpu.PrefetchScalarGridSpec(
            num_scalar_prefetch=0,
            grid=grid,
            in_specs=[
                pl.BlockSpec((tm, tk), lambda i, k: (i, k)),       # A tile
                pl.BlockSpec((tk, fout_p), lambda i, k: (k, 0)),   # support tile
                pl.BlockSpec((1, fout_p), lambda i, k: (0, 0)),    # bias
            ],
            out_specs=pl.BlockSpec((tm, fout_p), lambda i, k: (i, 0)),
            scratch_shapes=[pltpu.VMEM((tm, fout_p), jnp.float32)],
        ),
        compiler_params=pltpu.CompilerParams(
            # row tiles parallel (megacore on v7x), reduction axis arbitrary+last
            dimension_semantics=("parallel", "arbitrary")),
        cost_estimate=pl.CostEstimate(
            flops=2 * n_rows_p * n_cols_p * fout_p,
            transcendentals=0,
            bytes_accessed=(n_rows_p * n_cols_p * 2 + n_cols_p * fout_p * 2
                            + n_rows_p * fout_p * 4 + fout_p * 4),
        ),
    )(a_p, support, b_p)

    # Slice off row / column padding.
    return out_p[:n, :fout]


def init_gcn_params(key, input_dim, output_dim, use_bias=True):
    """Matches nn.init.kaiming_uniform_ (a=0) on a (input_dim, output_dim)
    tensor: PyTorch fan_in = dim 1 = output_dim, bound = sqrt(6 / fan_in)."""
    fan_in = output_dim
    bound = (6.0 / fan_in) ** 0.5
    w = jax.random.uniform(
        key, (input_dim, output_dim), dtype=jnp.float32,
        minval=-bound, maxval=bound)
    b = jnp.zeros((output_dim,), dtype=jnp.float32) if use_bias else None
    return w, b


if __name__ == "__main__":
    # Small graph; N deliberately not tile-aligned to exercise padding & tiling.
    N, FIN, FOUT = 300, 64, 32

    key = jax.random.PRNGKey(0)
    kx, ka, kw = jax.random.split(key, 3)

    x = jax.random.normal(kx, (N, FIN), dtype=jnp.float32)
    # Dense 0/1 adjacency (stand-in for the sparse matrix) with self loops.
    a_raw = (jax.random.uniform(ka, (N, N)) < 0.1).astype(jnp.float32)
    adjacency = jnp.clip(a_raw + jnp.eye(N, dtype=jnp.float32), 0.0, 1.0)

    weight, bias = init_gcn_params(kw, FIN, FOUT, use_bias=True)

    gcn = jax.jit(graph_convolution)
    out = jax.block_until_ready(gcn(x, weight, adjacency, bias))

    # Plain-JAX f32 reference (same math).
    ref = adjacency @ (x @ weight) + bias[None, :]

    assert out.shape == (N, FOUT)
    err = float(jnp.max(jnp.abs(out - ref)))
    scale = float(jnp.max(jnp.abs(ref)))
    # bf16 operands + f32 accumulation: expect well under 2% of output scale.
    assert err <= 2e-2 * scale, (err, scale)

    print("KERNEL_OK")
</pallas_src>

<mosaic_0001>
module attributes {stable_mosaic.version = 11 : i64} {
  func.func @_support_kernel(%arg0: i32, %arg1: memref<128x64xbf16, #tpu.memory_space<vmem>>, %arg2: memref<64x128xbf16, #tpu.memory_space<vmem>>, %arg3: memref<128x128xbf16, #tpu.memory_space<vmem>>) attributes {dimension_semantics = [#tpu.dimension_semantics<parallel>], iteration_bounds = array<i64: 3>, scalar_prefetch = 0 : i64, scratch_operands = 0 : i64, tpu.core_type = #tpu.core_type<tc>, window_params = [{transform_indices = @transform_0, window_bounds = array<i64: 128, 64>}, {pipeline_mode = #tpu.pipeline_mode<synchronous>, transform_indices = @transform_1, window_bounds = array<i64: 64, 128>}, {transform_indices = @transform_2, window_bounds = array<i64: 128, 128>}]} {
    %c0 = arith.constant 0 : index
    %c0_0 = arith.constant 0 : index
    %0 = vector.load %arg1[%c0, %c0_0] : memref<128x64xbf16, #tpu.memory_space<vmem>>, vector<128x64xbf16>
    %c0_1 = arith.constant 0 : index
    %c0_2 = arith.constant 0 : index
    %1 = vector.load %arg2[%c0_1, %c0_2] : memref<64x128xbf16, #tpu.memory_space<vmem>>, vector<64x128xbf16>
    %cst = arith.constant dense<0.000000e+00> : vector<128x128xf32>
    %2 = tpu.matmul %0, %1, %cst {dimension_numbers = #tpu.dot_dimension_numbers<[1], [0], [0], [1], [0, 0, 1, 1], [], []>} : vector<128x64xbf16>, vector<64x128xbf16>, vector<128x128xf32> -> vector<128x128xf32>
    %3 = arith.truncf %2 : vector<128x128xf32> to vector<128x128xbf16>
    %c0_3 = arith.constant 0 : index
    %c0_4 = arith.constant 0 : index
    %4 = vector.load %arg3[%c0_3, %c0_4] : memref<128x128xbf16, #tpu.memory_space<vmem>>, vector<128x128xbf16>
    tpu.vector_store %arg3[%c0_3, %c0_4], %3 {strides = array<i32>} : memref<128x128xbf16, #tpu.memory_space<vmem>>, vector<128x128xbf16>,
    return
  }
  func.func @transform_0(%arg0: i32) -> (i32, i32) {
    %c0_i32 = arith.constant 0 : i32
    %c0_i32_0 = arith.constant 0 : i32
    return %arg0, %c0_i32 : i32, i32
  }
  func.func @transform_1(%arg0: i32) -> (i32, i32) {
    %c0_i32 = arith.constant 0 : i32
    %c0_i32_0 = arith.constant 0 : i32
    %c0_i32_1 = arith.constant 0 : i32
    return %c0_i32, %c0_i32_0 : i32, i32
  }
  func.func @transform_2(%arg0: i32) -> (i32, i32) {
    %c0_i32 = arith.constant 0 : i32
    %c0_i32_0 = arith.constant 0 : i32
    return %arg0, %c0_i32 : i32, i32
  }
}

module attributes {stable_mosaic.version = 11 : i64} {
  func.func @_aggregate_kernel(%arg0: i32, %arg1: i32, %arg2: memref<256x384xbf16, #tpu.memory_space<vmem>>, %arg3: memref<384x128xbf16, #tpu.memory_space<vmem>>, %arg4: memref<1x128xf32, #tpu.memory_space<vmem>>, %arg5: memref<256x128xf32, #tpu.memory_space<vmem>>, %arg6: memref<256x128xf32, #tpu.memory_space<vmem>>) attributes {dimension_semantics = [#tpu.dimension_semantics<parallel>, #tpu.dimension_semantics<arbitrary>], iteration_bounds = array<i64: 2, 1>, scalar_prefetch = 0 : i64, scratch_operands = 1 : i64, tpu.core_type = #tpu.core_type<tc>, window_params = [{transform_indices = @transform_0, window_bounds = array<i64: 256, 384>}, {transform_indices = @transform_1, window_bounds = array<i64: 384, 128>}, {pipeline_mode = #tpu.pipeline_mode<synchronous>, transform_indices = @transform_2, window_bounds = array<i64: 1, 128>}, {transform_indices = @transform_3, window_bounds = array<i64: 256, 128>}]} {
    %c0_i32 = arith.constant 0 : i32
    %0 = arith.cmpi eq, %arg1, %c0_i32 : i32
    %1 = arith.extui %0 : i1 to i32
    %c0_i32_0 = arith.constant 0 : i32
    %2 = arith.cmpi ne, %1, %c0_i32_0 : i32
    scf.if %2 {
      %cst_10 = arith.constant 0.000000e+00 : f32
      %12 = vector.broadcast %cst_10 : f32 to vector<256x128xf32>
      %c0_11 = arith.constant 0 : index
      %c0_12 = arith.constant 0 : index
      %13 = vector.load %arg6[%c0_11, %c0_12] : memref<256x128xf32, #tpu.memory_space<vmem>>, vector<256x128xf32>
      tpu.vector_store %arg6[%c0_11, %c0_12], %12 {strides = array<i32>} : memref<256x128xf32, #tpu.memory_space<vmem>>, vector<256x128xf32>,
    } else {
    }
    %c0 = arith.constant 0 : index
    %c0_1 = arith.constant 0 : index
    %3 = vector.load %arg6[%c0, %c0_1] : memref<256x128xf32, #tpu.memory_space<vmem>>, vector<256x128xf32>
    %c0_2 = arith.constant 0 : index
    %c0_3 = arith.constant 0 : index
    %4 = vector.load %arg2[%c0_2, %c0_3] : memref<256x384xbf16, #tpu.memory_space<vmem>>, vector<256x384xbf16>
    %c0_4 = arith.constant 0 : index
    %c0_5 = arith.constant 0 : index
    %5 = vector.load %arg3[%c0_4, %c0_5] : memref<384x128xbf16, #tpu.memory_space<vmem>>, vector<384x128xbf16>
    %cst = arith.constant dense<0.000000e+00> : vector<256x128xf32>
    %6 = tpu.matmul %4, %5, %cst {dimension_numbers = #tpu.dot_dimension_numbers<[1], [0], [0], [1], [0, 0, 1, 1], [], []>} : vector<256x384xbf16>, vector<384x128xbf16>, vector<256x128xf32> -> vector<256x128xf32>
    %7 = arith.addf %3, %6 : vector<256x128xf32>
    %c0_6 = arith.constant 0 : index
    %c0_7 = arith.constant 0 : index
    %8 = vector.load %arg6[%c0_6, %c0_7] : memref<256x128xf32, #tpu.memory_space<vmem>>, vector<256x128xf32>
    tpu.vector_store %arg6[%c0_6, %c0_7], %7 {strides = array<i32>} : memref<256x128xf32, #tpu.memory_space<vmem>>, vector<256x128xf32>,
    %c0_i32_8 = arith.constant 0 : i32
    %9 = arith.cmpi eq, %arg1, %c0_i32_8 : i32
    %10 = arith.extui %9 : i1 to i32
    %c0_i32_9 = arith.constant 0 : i32
    %11 = arith.cmpi ne, %10, %c0_i32_9 : i32
    scf.if %11 {
      %c0_10 = arith.constant 0 : index
      %c0_11 = arith.constant 0 : index
      %12 = vector.load %arg6[%c0_10, %c0_11] : memref<256x128xf32, #tpu.memory_space<vmem>>, vector<256x128xf32>
      %c0_12 = arith.constant 0 : index
      %c0_13 = arith.constant 0 : index
      %13 = vector.load %arg4[%c0_12, %c0_13] : memref<1x128xf32, #tpu.memory_space<vmem>>, vector<1x128xf32>
      %14 = vector.broadcast %13 : vector<1x128xf32> to vector<256x128xf32>
      %15 = arith.addf %12, %14 : vector<256x128xf32>
      %c0_14 = arith.constant 0 : index
      %c0_15 = arith.constant 0 : index
      %16 = vector.load %arg5[%c0_14, %c0_15] : memref<256x128xf32, #tpu.memory_space<vmem>>, vector<256x128xf32>
      tpu.vector_store %arg5[%c0_14, %c0_15], %15 {strides = array<i32>} : memref<256x128xf32, #tpu.memory_space<vmem>>, vector<256x128xf32>,
    } else {
    }
    return
  }
  func.func @transform_0(%arg0: i32, %arg1: i32) -> (i32, i32) {
    %c0_i32 = arith.constant 0 : i32
    return %arg0, %arg1 : i32, i32
  }
  func.func @transform_1(%arg0: i32, %arg1: i32) -> (i32, i32) {
    %c0_i32 = arith.constant 0 : i32
    %c0_i32_0 = arith.constant 0 : i32
    return %arg1, %c0_i32 : i32, i32
  }
  func.func @transform_2(%arg0: i32, %arg1: i32) -> (i32, i32) {
    %c0_i32 = arith.constant 0 : i32
    %c0_i32_0 = arith.constant 0 : i32
    %c0_i32_1 = arith.constant 0 : i32
    return %c0_i32, %c0_i32_0 : i32, i32
  }
  func.func @transform_3(%arg0: i32, %arg1: i32) -> (i32, i32) {
    %c0_i32 = arith.constant 0 : i32
    %c0_i32_0 = arith.constant 0 : i32
    return %arg0, %c0_i32 : i32, i32
  }
}

</mosaic_0001>

<bundles_post_ra>
// kernel: graph_convolution.2
= control target key start
LH: loop header
LB: loop body
LE: loop exit
PB: predicated region body
PF: predicated region fallthrough
CT: control target
= control target key end

     0   :  { %s567_s9 = smov 0   ;;  %s611_s0 = inlined_call_operand.vmem [shape: bf16[384,64], index: 0, kind: input, shape index: {}]   ;;  %s612_s1 = inlined_call_operand.vmem [shape: bf16[64,128], index: 1, kind: input, shape index: {}]   ;;  %s613_s2 = inlined_call_operand.vmem [shape: bf16[384,128], index: 2, kind: output, shape index: {}]  }
   0x1 LB: > { %s398_s10 = sadd.s32 4294967295, %s550_s9   ;;  %p402_p0 = scmp.ge.s32.totalorder %s550_s9, 1  ;;  %s550_s9 = sphi %s567_s9, %s12_s9  }
   0x2   : > { %p113_p1 = scmp.lt.s32.totalorder %s550_s9, 4 }
   0x4   : > { %p114_p2 = pnand %p402_p0, %p113_p1 }
   0x5   : > { %s403_s13 = sshll.u32 (!%p114_p2), %s398_s10, 4 }
   0x6   : > { %117 = sbr.rel (%p114_p2) target bundleno = 188 (0xbc), region = 28  ;;  %p136_p3 = scmp.lt.s32.totalorder (!%p114_p2), %s403_s13, 47 }
   0xb   : > { %v476_v0 = vld [vmem:[%s612_s1 + $0x18] sm:$0xff]  ;;  %v475_v1 = vld [vmem:[%s612_s1 + $0x10] sm:$0xff]  ;;  %s615_s13 = smov (!%p136_p3, %s403_s13), 47  ;;  %v474_v2 = vld [vmem:[%s612_s1 + $0x8] sm:$0xff]  ;;  %vm236_vm0 = vcmask 523264  }
   0xc   : > { %265 = vmatpush.bf16.msra.mxu0 %v476_v0  ;;  %524 = vmatpush.bf16.msra.mxu1 %v476_v0  ;;  %s404_s18 = sshll.u32 %s615_s13, 2  ;;  %v473_v3 = vld [vmem:[%s612_s1] sm:$0xff] }
   0xd   : > { %525 = vmatpush.bf16.msra.mxu2 %v476_v0  ;;  %526 = vmatpush.bf16.msra.mxu3 %v476_v0  ;;  %s139_s23 = scalar_lea.vmem %s611_s0, %s404_s18  ;;  %s145_s26 = scalar_lea.vmem %s613_s2, %s404_s18 }
   0xe   : > { %v465_v4 = vld [vmem:[%s139_s23] sm:$0xff]  ;;  %v467_v5 = vld [vmem:[%s139_s23 + $0x10] sm:$0xff]  ;;  %v466_v8 = vld [vmem:[%s139_s23 + $0x8] sm:$0xff] }
   0xf   : > { %v469_v6 = vld [vmem:[%s139_s23 + $0x20] sm:$0xff]  ;;  %v471_v7 = vld [vmem:[%s139_s23 + $0x30] sm:$0xff]  ;;  %v468_v9 = vld [vmem:[%s139_s23 + $0x18] sm:$0xff] }
  0x10   : > { %266 = vmatpush.bf16.msra.mxu0 %v475_v1  ;;  %527 = vmatpush.bf16.msra.mxu1 %v475_v1  ;;  %v470_v10 = vld [vmem:[%s139_s23 + $0x28] sm:$0xff]  ;;  %v472_v11 = vld [vmem:[%s139_s23 + $0x38] sm:$0xff] }
  0x11   : > { %528 = vmatpush.bf16.msra.mxu2 %v475_v1  ;;  %529 = vmatpush.bf16.msra.mxu3 %v475_v1 }
  0x14   : > { %267 = vmatpush.bf16.msra.mxu0 %v474_v2  ;;  %530 = vmatpush.bf16.msra.mxu1 %v474_v2 }
  0x15   : > { %531 = vmatpush.bf16.msra.mxu2 %v474_v2  ;;  %532 = vmatpush.bf16.msra.mxu3 %v474_v2 }
  0x18   : > { %268 = vmatpush.bf16.msra.mxu0 %v473_v3  ;;  %533 = vmatpush.bf16.msra.mxu1 %v473_v3 }
  0x19   : > { %534 = vmatpush.bf16.msra.mxu2 %v473_v3  ;;  %535 = vmatpush.bf16.msra.mxu3 %v473_v3 }
  0x1b   : > { %455 = vmatmul.msk.bf16.vlgmr.msra.gmra.mxu0 %vm236_vm0, %v465_v4  ;;  %457 = vmatmul.msk.bf16.vlgmr.msra.gmra.mxu1 %vm236_vm0, %v467_v5 }
  0x1c   : > { %459 = vmatmul.msk.bf16.vlgmr.msra.gmra.mxu2 %vm236_vm0, %v469_v6  ;;  %461 = vmatmul.msk.bf16.vlgmr.msra.gmra.mxu3 %vm236_vm0, %v471_v7 }
  0x2b   : > { %456 = vmatmul.msk.bf16.gmra.mxu0 %vm236_vm0, %v466_v8  ;;  %458 = vmatmul.msk.bf16.gmra.mxu1 %vm236_vm0, %v468_v9 }
  0x2c   : > { %460 = vmatmul.msk.bf16.gmra.mxu2 %vm236_vm0, %v470_v10  ;;  %462 = vmatmul.msk.bf16.gmra.mxu3 %vm236_vm0, %v472_v11 }
  0x98   : > { %v270_v12 = vpop.f32.mrf.mxu0  ;;  %v280_v13 = vpop.f32.mrf.mxu1 }
  0x9f   : > { %v290_v14 = vpop.f32.mrf.mxu2  ;;  %v300_v15 = vpop.f32.mrf.mxu3 }
  0xa0   : > { %v272_v16 = vpop.f32.mrf.mxu0  ;;  %v282_v17 = vpop.f32.mrf.mxu1 }
  0xa1   : > { %v480_v18 = vpack.c.bf16 %v272_v16, %v270_v12  ;;  %v490_v19 = vpack.c.bf16 %v282_v17, %v280_v13 }
  0xa3   : > { %481 = vst [vmem:[%s145_s26] sm:$0xff] %v480_v18  }
  0xa4   : > { %518 = vst [vmem:[%s145_s26 + $0x10] sm:$0xff] %v490_v19  }
  0xa7   : > { %v292_v20 = vpop.f32.mrf.mxu2  ;;  %v302_v21 = vpop.f32.mrf.mxu3 }
  0xa8   : > { %v500_v22 = vpack.c.bf16 %v292_v20, %v290_v14  ;;  %v510_v23 = vpack.c.bf16 %v302_v21, %v300_v15  ;;  %v275_v24 = vpop.f32.mrf.mxu0  ;;  %v285_v25 = vpop.f32.mrf.mxu1 }
  0xaa   : > { %520 = vst [vmem:[%s145_s26 + $0x20] sm:$0xff] %v500_v22  }
  0xab   : > { %522 = vst [vmem:[%s145_s26 + $0x30] sm:$0xff] %v510_v23  }
  0xaf   : > { %v295_v26 = vpop.f32.mrf.mxu2  ;;  %v305_v27 = vpop.f32.mrf.mxu3 }
  0xb0   : > { %v277_v28 = vpop.f32.mrf.mxu0  ;;  %v287_v29 = vpop.f32.mrf.mxu1 }
  0xb1   : > { %v485_v30 = vpack.c.bf16 %v277_v28, %v275_v24  ;;  %v495_v31 = vpack.c.bf16 %v287_v29, %v285_v25 }
  0xb3   : > { %517 = vst [vmem:[%s145_s26 + $0x8] sm:$0xff] %v485_v30  }
  0xb4   : > { %519 = vst [vmem:[%s145_s26 + $0x18] sm:$0xff] %v495_v31  }
  0xb7   : > { %v297_v32 = vpop.f32.mrf.mxu2  ;;  %v307_v33 = vpop.f32.mrf.mxu3 }
  0xb8   : > { %v505_v34 = vpack.c.bf16 %v297_v32, %v295_v26  ;;  %v515_v35 = vpack.c.bf16 %v307_v33, %v305_v27 }
  0xba   : > { %521 = vst [vmem:[%s145_s26 + $0x28] sm:$0xff] %v505_v34  }
  0xbb   : > { %523 = vst [vmem:[%s145_s26 + $0x38] sm:$0xff] %v515_v35  }
  0xbc PF: > { %s12_s9 = sadd.s32 1, %s550_s9  }
  0xbd   : > { %p9_p4 = scmp.ge.s32.totalorder %s12_s9, 5  }
  0xbf   :  { %11 = sbr.rel (!%p9_p4) target bundleno = 1 (0x1), region = 58 }

// kernel: graph_convolution.3
= control target key start
LH: loop header
LB: loop body
LE: loop exit
PB: predicated region body
PF: predicated region fallthrough
CT: control target
= control target key end

     0   :  { %s1793_s12 = smov 0   ;;  %s1795_s13 = smov 0   ;;  %s2170_s0 = inlined_call_operand.vmem [shape: bf16[512,384], index: 0, kind: input, shape index: {}]   ;;  %s2171_s1 = inlined_call_operand.vmem [shape: bf16[384,128], index: 1, kind: input, shape index: {}]   ;;  %s2172_s2 = inlined_call_operand.vmem [shape: f32[1,128], index: 2, kind: input, shape index: {}]   ;;  %s2173_s3 = inlined_call_operand.vmem [shape: f32[512,128], index: 3, kind: output, shape index: {}]  }
   0x1   :  { %s1797_s14 = smov 0  }
   0x2 LB: > { %s25_s15 = sadd.s32 1, %s1767_s13  ;;  %p1332_p0 = scmp.ge.s32.totalorder %s1771_s14, 1  ;;  %s1771_s14 = sphi %s1797_s14, %s13_s14   ;;  %s1767_s13 = sphi %s1795_s13, %s2175_s13   ;;  %s1763_s12 = sphi %s1793_s12, %s2174_s12  }
   0x3   : > { %p27_p1 = scmp.ge.s32.totalorder %s25_s15, 2  ;;  %p169_p2 = scmp.lt.s32.totalorder %s1771_s14, 3 }
   0x5   : > { %s2177_s15 = smov (%p27_p1, %s25_s15), 0  ;;  %p170_p3 = pnand %p1332_p0, %p169_p2 }
   0x6   : > { %s1333_s7 = sshll.u32 (!%p170_p3), %s1763_s12, 5 }
   0x7   : > { %173 = sbr.rel (%p170_p3) target bundleno = 367 (0x16f), region = 32  ;;  %p205_p4 = scmp.lt.s32.totalorder (!%p170_p3), %s1333_s7, 63 }
   0xc   : > { %v1682_v0 = vld [vmem:[%s2171_s1 + $0x38] sm:$0xff]  ;;  %v1681_v3 = vld [vmem:[%s2171_s1 + $0x30] sm:$0xff]  ;;  %v1680_v6 = vld [vmem:[%s2171_s1 + $0x28] sm:$0xff]  ;;  %s2179_s7 = smov (!%p205_p4, %s1333_s7), 63 }
   0xd   : > { %v1819_v1 = vld [vmem:[%s2171_s1 + $0x78] sm:$0xff]  ;;  %807 = vmatpush.bf16.msra.mxu0 %v1682_v0  ;;  %1699 = vmatpush.bf16.msra.mxu3 %v1682_v0  ;;  %v1834_v4 = vld [vmem:[%s2171_s1 + $0x70] sm:$0xff]  ;;  %v1849_v7 = vld [vmem:[%s2171_s1 + $0x68] sm:$0xff]  ;;  %s1723_s25 = smul.u32 12, %s2179_s7  ;;  %s1336_s22 = sshll.u32 %s2179_s7, 3 }
   0xe   : > { %v1824_v2 = vld [vmem:[%s2171_s1 + $0xb8] sm:$0xff]  ;;  %896 = vmatpush.bf16.msra.mxu1 %v1819_v1  ;;  %v1839_v5 = vld [vmem:[%s2171_s1 + $0xb0] sm:$0xff]  ;;  %v1854_v8 = vld [vmem:[%s2171_s1 + $0xa8] sm:$0xff]  ;;  %s2025_s27 = scalar_lea.vmem %s2173_s3, %s1336_s22 }
   0xf   : > { %985 = vmatpush.bf16.msra.mxu2 %v1824_v2  ;;  %v1679_v9 = vld [vmem:[%s2171_s1 + $0x20] sm:$0xff]  ;;  %v1678_v12 = vld [vmem:[%s2171_s1 + $0x18] sm:$0xff]  ;;  %v1677_v15 = vld [vmem:[%s2171_s1 + $0x10] sm:$0xff]  ;;  %s1906_s8 = scalar_lea.vmem %s2170_s0, %s1723_s25 }
  0x10   : > { %v1865_v10 = vld [vmem:[%s2171_s1 + $0x60] sm:$0xff]  ;;  %v1686_v13 = vld [vmem:[%s2171_s1 + $0x58] sm:$0xff]  ;;  %v1685_v16 = vld [vmem:[%s2171_s1 + $0x50] sm:$0xff] }
  0x11   : > { %808 = vmatpush.bf16.msra.mxu0 %v1681_v3  ;;  %1700 = vmatpush.bf16.msra.mxu3 %v1681_v3  ;;  %v1870_v11 = vld [vmem:[%s2171_s1 + $0xa0] sm:$0xff]  ;;  %v1885_v14 = vld [vmem:[%s2171_s1 + $0x98] sm:$0xff]  ;;  %v1898_v17 = vld [vmem:[%s2171_s1 + $0x90] sm:$0xff] }
  0x12   : > { %897 = vmatpush.bf16.msra.mxu1 %v1834_v4  ;;  %v1676_v18 = vld [vmem:[%s2171_s1 + $0x8] sm:$0xff]  ;;  %v1675_v21 = vld [vmem:[%s2171_s1] sm:$0xff]  ;;  %v1341_v29 = vld [vmem:[%s1906_s8 + $0xc] sm:$0xf0] }
  0x13   : > { %986 = vmatpush.bf16.msra.mxu2 %v1839_v5  ;;  %v1684_v19 = vld [vmem:[%s2171_s1 + $0x48] sm:$0xff]  ;;  %v1683_v22 = vld [vmem:[%s2171_s1 + $0x40] sm:$0xff]  ;;  %v1629_v31 = vld [vmem:[%s1906_s8 + $0x10] sm:$0xf0] }
  0x14   : > { %v1915_v20 = vld [vmem:[%s2171_s1 + $0x88] sm:$0xff]  ;;  %v1926_v23 = vld [vmem:[%s2171_s1 + $0x80] sm:$0xff]  ;;  %v1351_v36 = vld [vmem:[%s1906_s8 + $0x18] sm:$0xf] }
  0x15   : > { %809 = vmatpush.bf16.msra.mxu0 %v1680_v6  ;;  %1701 = vmatpush.bf16.msra.mxu3 %v1680_v6  ;;  %v1339_v24 = vld [vmem:[%s1906_s8] sm:$0xf]  ;;  %v1628_v25 = vld [vmem:[%s1906_s8 + $0x8] sm:$0xf0]  ;;  %v1627_v28 = vld [vmem:[%s1906_s8 + $0x4] sm:$0xf] }
  0x16   : > { %898 = vmatpush.bf16.msra.mxu1 %v1849_v7  ;;  %v1483_v26 = vld [vmem:[%s1906_s8 + $0x120] sm:$0xf]  ;;  %v1664_v27 = vld [vmem:[%s1906_s8 + $0x128] sm:$0xf0]  ;;  %v1347_v30 = vld [vmem:[%s1906_s8 + $0x8] sm:$0xf]  ;;  %v1340_v32 = vor.u32 %v1628_v25, %v1339_v24  ;;  %v1344_v34 = vor.u32 %v1627_v28, %v1341_v29 }
  0x17   : > { %987 = vmatpush.bf16.msra.mxu2 %v1854_v8  ;;  %v1484_v33 = vor.u32 %v1664_v27, %v1483_v26  ;;  %v1348_v35 = vor.u32 %v1629_v31, %v1347_v30  ;;  %v1631_v37 = vld [vmem:[%s1906_s8 + $0x20] sm:$0xf0]  ;;  %v1495_v38 = vld [vmem:[%s1906_s8 + $0x138] sm:$0xf]  ;;  %v1630_v40 = vld [vmem:[%s1906_s8 + $0x1c] sm:$0xf] }
  0x18   : > { %v1667_v39 = vld [vmem:[%s1906_s8 + $0x140] sm:$0xf0]  ;;  %v1353_v41 = vld [vmem:[%s1906_s8 + $0x24] sm:$0xf0]  ;;  %v1359_v42 = vld [vmem:[%s1906_s8 + $0x20] sm:$0xf]  ;;  %v1352_v44 = vor.u32 %v1631_v37, %v1351_v36 }
  0x19   : > { %810 = vmatpush.bf16.msra.mxu0 %v1679_v9  ;;  %1702 = vmatpush.bf16.msra.mxu3 %v1679_v9  ;;  %v1632_v43 = vld [vmem:[%s1906_s8 + $0x28] sm:$0xf0]  ;;  %v1496_v45 = vor.u32 %v1667_v39, %v1495_v38  ;;  %v1356_v46 = vor.u32 %v1630_v40, %v1353_v41  ;;  %v1363_v48 = vld [vmem:[%s1906_s8 + $0x30] sm:$0xf]  ;;  %v1634_v49 = vld [vmem:[%s1906_s8 + $0x38] sm:$0xf0] }
  0x1a   : > { %899 = vmatpush.bf16.msra.mxu1 %v1865_v10  ;;  %v1360_v47 = vor.u32 %v1632_v43, %v1359_v42  ;;  %v1507_v50 = vld [vmem:[%s1906_s8 + $0x150] sm:$0xf]  ;;  %v1670_v51 = vld [vmem:[%s1906_s8 + $0x158] sm:$0xf0]  ;;  %v1633_v52 = vld [vmem:[%s1906_s8 + $0x34] sm:$0xf]  ;;  %v1364_v56 = vor.u32 %v1634_v49, %v1363_v48 }
  0x1b   : > { %988 = vmatpush.bf16.msra.mxu2 %v1870_v11  ;;  %v1365_v53 = vld [vmem:[%s1906_s8 + $0x3c] sm:$0xf0]  ;;  %v1371_v54 = vld [vmem:[%s1906_s8 + $0x38] sm:$0xf]  ;;  %v1635_v55 = vld [vmem:[%s1906_s8 + $0x40] sm:$0xf0]  ;;  %v1508_v57 = vor.u32 %v1670_v51, %v1507_v50 }
  0x1c   : > { %v1368_v58 = vor.u32 %v1633_v52, %v1365_v53  ;;  %v1372_v59 = vor.u32 %v1635_v55, %v1371_v54  ;;  %v1375_v60 = vld [vmem:[%s1906_s8 + $0x48] sm:$0xf]  ;;  %v1637_v61 = vld [vmem:[%s1906_s8 + $0x50] sm:$0xf0]  ;;  %v1636_v0 = vld [vmem:[%s1906_s8 + $0x4c] sm:$0xf] }
  0x1d   : > { %811 = vmatpush.bf16.msra.mxu0 %v1678_v12  ;;  %1703 = vmatpush.bf16.msra.mxu3 %v1678_v12  ;;  %v1519_v62 = vld [vmem:[%s1906_s8 + $0x168] sm:$0xf]  ;;  %v1673_v63 = vld [vmem:[%s1906_s8 + $0x170] sm:$0xf0]  ;;  %v1638_v3 = vld [vmem:[%s1906_s8 + $0x58] sm:$0xf0] }
  0x1e   : > { %900 = vmatpush.bf16.msra.mxu1 %v1686_v13  ;;  %v1640_v9 = vld [vmem:[%s1906_s8 + $0x68] sm:$0xf0]  ;;  %v1485_v12 = vld [vmem:[%s1906_s8 + $0x12c] sm:$0xf0]  ;;  %v1666_v24 = vld [vmem:[%s1906_s8 + $0x13c] sm:$0xf] }
  0x1f   : > { %989 = vmatpush.bf16.msra.mxu2 %v1885_v14  ;;  %v1497_v25 = vld [vmem:[%s1906_s8 + $0x144] sm:$0xf0]  ;;  %v1407_v26 = vld [vmem:[%s1906_s8 + $0x80] sm:$0xf]  ;;  %v1644_v27 = vld [vmem:[%s1906_s8 + $0x88] sm:$0xf0] }
  0x20   : > { %v1500_v29 = vor.u32 %v1666_v24, %v1497_v25  ;;  %v1408_v31 = vor.u32 %v1644_v27, %v1407_v26  ;;  %v1509_v36 = vld [vmem:[%s1906_s8 + $0x15c] sm:$0xf0]  ;;  %v1419_v38 = vld [vmem:[%s1906_s8 + $0x98] sm:$0xf]  ;;  %v1647_v39 = vld [vmem:[%s1906_s8 + $0xa0] sm:$0xf0] }
  0x21   : > { %812 = vmatpush.bf16.msra.mxu0 %v1677_v15  ;;  %1704 = vmatpush.bf16.msra.mxu3 %v1677_v15  ;;  %v1641_v15 = vld [vmem:[%s1906_s8 + $0x70] sm:$0xf0]  ;;  %v1413_v37 = vld [vmem:[%s1906_s8 + $0x9c] sm:$0xf0]  ;;  %v1420_v43 = vor.u32 %v1647_v39, %v1419_v38  ;;  %v1521_v48 = vld [vmem:[%s1906_s8 + $0x174] sm:$0xf0] }
  0x22   : > { %901 = vmatpush.bf16.msra.mxu1 %v1685_v16  ;;  %v1425_v49 = vld [vmem:[%s1906_s8 + $0xb4] sm:$0xf0]  ;;  %v1431_v50 = vld [vmem:[%s1906_s8 + $0xb0] sm:$0xf]  ;;  %v1650_v51 = vld [vmem:[%s1906_s8 + $0xb8] sm:$0xf0] }
  0x23   : > { %990 = vmatpush.bf16.msra.mxu2 %v1898_v17  ;;  %v1432_v55 = vor.u32 %v1650_v51, %v1431_v50 }
  0x25   : > { %813 = vmatpush.bf16.msra.mxu0 %v1676_v18  ;;  %1705 = vmatpush.bf16.msra.mxu3 %v1676_v18 }
  0x26   : > { %902 = vmatpush.bf16.msra.mxu1 %v1684_v19 }
  0x27   : > { %991 = vmatpush.bf16.msra.mxu2 %v1915_v20 }
  0x29   : > { %814 = vmatpush.bf16.msra.mxu0 %v1675_v21  ;;  %1706 = vmatpush.bf16.msra.mxu3 %v1675_v21  ;;  %v1643_v21 = vld [vmem:[%s1906_s8 + $0x80] sm:$0xf0] }
  0x2a   : > { %903 = vmatpush.bf16.msra.mxu1 %v1683_v22 }
  0x2b   : > { %992 = vmatpush.bf16.msra.mxu2 %v1926_v23 }
  0x2c   : > { %815 = vmatmul.bf16.vlgmr.msra.gmra.mxu0 %v1340_v32  ;;  %875 = vmatmul.bf16.vlgmr.msra.gmra.mxu3 %v1484_v33  ;;  %v1411_v32 = vld [vmem:[%s1906_s8 + $0x90] sm:$0xf]  ;;  %v1646_v33 = vld [vmem:[%s1906_s8 + $0x98] sm:$0xf0] }
  0x2d   : > { %1707 = vmatpush.bf16.msrb.mxu3 %v1819_v1  ;;  %904 = vmatmul.bf16.vlgmr.msra.gmra.mxu1 %v1344_v34  ;;  %v1377_v1 = vld [vmem:[%s1906_s8 + $0x54] sm:$0xf0]  ;;  %v1645_v34 = vld [vmem:[%s1906_s8 + $0x94] sm:$0xf]  ;;  %v1412_v40 = vor.u32 %v1646_v33, %v1411_v32 }
  0x2e   : > { %993 = vmatmul.bf16.vlgmr.msra.gmra.mxu2 %v1348_v35  ;;  %v1380_v6 = vor.u32 %v1636_v0, %v1377_v1  ;;  %v1669_v35 = vld [vmem:[%s1906_s8 + $0x154] sm:$0xf]  ;;  %v1416_v42 = vor.u32 %v1645_v34, %v1413_v37 }
  0x2f   : > { %v1512_v41 = vor.u32 %v1669_v35, %v1509_v36 }
  0x31   : > { %1708 = vmatpush.bf16.msrb.mxu3 %v1834_v4  ;;  %v1376_v4 = vor.u32 %v1637_v61, %v1375_v60  ;;  %v1665_v60 = vld [vmem:[%s1906_s8 + $0x130] sm:$0xf0]  ;;  %v1437_v61 = vld [vmem:[%s1906_s8 + $0xcc] sm:$0xf0] }
  0x35   : > { %1709 = vmatpush.bf16.msrb.mxu3 %v1849_v7 }
  0x39   : > { %1710 = vmatpush.bf16.msrb.mxu3 %v1865_v10  ;;  %v1639_v10 = vld [vmem:[%s1906_s8 + $0x64] sm:$0xf] }
  0x3c   : > { %820 = vmatmul.bf16.gmra.mxu0 %v1352_v44  ;;  %880 = vmatmul.bf16.gmra.mxu3 %v1496_v45  ;;  %v1423_v44 = vld [vmem:[%s1906_s8 + $0xa8] sm:$0xf]  ;;  %v1649_v45 = vld [vmem:[%s1906_s8 + $0xb0] sm:$0xf0] }
  0x3d   : > { %1711 = vmatpush.bf16.msrb.mxu3 %v1686_v13  ;;  %909 = vmatmul.bf16.gmra.mxu1 %v1356_v46  ;;  %v1389_v13 = vld [vmem:[%s1906_s8 + $0x6c] sm:$0xf0]  ;;  %v1648_v46 = vld [vmem:[%s1906_s8 + $0xac] sm:$0xf]  ;;  %v1424_v52 = vor.u32 %v1649_v45, %v1423_v44  ;;  %v1671_v44 = vld [vmem:[%s1906_s8 + $0x160] sm:$0xf0] }
  0x3e   : > { %998 = vmatmul.bf16.gmra.mxu2 %v1360_v47  ;;  %v1392_v18 = vor.u32 %v1639_v10, %v1389_v13  ;;  %v1672_v47 = vld [vmem:[%s1906_s8 + $0x16c] sm:$0xf]  ;;  %v1428_v54 = vor.u32 %v1648_v46, %v1425_v49  ;;  %v1461_v45 = vld [vmem:[%s1906_s8 + $0xfc] sm:$0xf0]  ;;  %v1467_v46 = vld [vmem:[%s1906_s8 + $0xf8] sm:$0xf] }
  0x3f   : > { %v1524_v53 = vor.u32 %v1672_v47, %v1521_v48  ;;  %v1659_v47 = vld [vmem:[%s1906_s8 + $0x100] sm:$0xf0] }
  0x41   : > { %1712 = vmatpush.bf16.msrb.mxu3 %v1685_v16 }
  0x45   : > { %1713 = vmatpush.bf16.msrb.mxu3 %v1684_v19 }
  0x49   : > { %1714 = vmatpush.bf16.msrb.mxu3 %v1683_v22  ;;  %v1642_v22 = vld [vmem:[%s1906_s8 + $0x7c] sm:$0xf] }
  0x4c   : > { %825 = vmatmul.bf16.gmra.mxu0 %v1364_v56  ;;  %885 = vmatmul.bf16.gmra.mxu3 %v1508_v57  ;;  %v1435_v56 = vld [vmem:[%s1906_s8 + $0xc0] sm:$0xf]  ;;  %v1652_v57 = vld [vmem:[%s1906_s8 + $0xc8] sm:$0xf0] }
  0x4d   : > { %1715 = vmatpush.bf16.msra.mxu3 %v1824_v2  ;;  %914 = vmatmul.bf16.gmra.mxu1 %v1368_v58  ;;  %v1383_v2 = vld [vmem:[%s1906_s8 + $0x50] sm:$0xf]  ;;  %v1651_v58 = vld [vmem:[%s1906_s8 + $0xc4] sm:$0xf]  ;;  %v1436_v0 = vor.u32 %v1652_v57, %v1435_v56  ;;  %v1468_v56 = vor.u32 %v1659_v47, %v1467_v46 }
  0x4e   : > { %1003 = vmatmul.bf16.gmra.mxu2 %v1372_v59  ;;  %v1384_v7 = vor.u32 %v1638_v3, %v1383_v2  ;;  %v1491_v59 = vld [vmem:[%s1906_s8 + $0x128] sm:$0xf]  ;;  %v1440_v3 = vor.u32 %v1651_v58, %v1437_v61 }
  0x4f   : > { %v1492_v1 = vor.u32 %v1665_v60, %v1491_v59 }
  0x51   : > { %1716 = vmatpush.bf16.msra.mxu3 %v1839_v5  ;;  %v1520_v5 = vor.u32 %v1673_v63, %v1519_v62  ;;  %v1443_v62 = vld [vmem:[%s1906_s8 + $0xc8] sm:$0xf]  ;;  %v1653_v63 = vld [vmem:[%s1906_s8 + $0xd0] sm:$0xf0] }
  0x55   : > { %1717 = vmatpush.bf16.msra.mxu3 %v1854_v8  ;;  %v1387_v8 = vld [vmem:[%s1906_s8 + $0x60] sm:$0xf] }
  0x56   : > { %v1388_v16 = vor.u32 %v1640_v9, %v1387_v8  ;;  %v2020_v8 = vld [vmem:[%s2172_s2] ss:$0 sm:$0xff] }
  0x59   : > { %1718 = vmatpush.bf16.msra.mxu3 %v1870_v11  ;;  %v1663_v11 = vld [vmem:[%s1906_s8 + $0x124] sm:$0xf] }
  0x5c   : > { %830 = vmatmul.bf16.gmra.mxu0 %v1376_v4  ;;  %890 = vmatmul.bf16.gmra.mxu3 %v1520_v5  ;;  %v1444_v4 = vor.u32 %v1653_v63, %v1443_v62 }
  0x5d   : > { %1719 = vmatpush.bf16.msra.mxu3 %v1885_v14  ;;  %919 = vmatmul.bf16.gmra.mxu1 %v1380_v6  ;;  %v1395_v14 = vld [vmem:[%s1906_s8 + $0x68] sm:$0xf] }
  0x5e   : > { %1008 = vmatmul.bf16.gmra.mxu2 %v1384_v7  ;;  %v1396_v19 = vor.u32 %v1641_v15, %v1395_v14  ;;  %v1447_v14 = vld [vmem:[%s1906_s8 + $0xd8] sm:$0xf]  ;;  %v1655_v15 = vld [vmem:[%s1906_s8 + $0xe0] sm:$0xf0] }
  0x61   : > { %1720 = vmatpush.bf16.msra.mxu3 %v1898_v17  ;;  %v1488_v17 = vor.u32 %v1663_v11, %v1485_v12 }
  0x65   : > { %1721 = vmatpush.bf16.msra.mxu3 %v1915_v20  ;;  %v1399_v20 = vld [vmem:[%s1906_s8 + $0x78] sm:$0xf] }
  0x66   : > { %v1400_v28 = vor.u32 %v1643_v21, %v1399_v20  ;;  %v1455_v20 = vld [vmem:[%s1906_s8 + $0xe0] sm:$0xf]  ;;  %v1656_v21 = vld [vmem:[%s1906_s8 + $0xe8] sm:$0xf0] }
  0x69   : > { %1722 = vmatpush.bf16.msra.mxu3 %v1926_v23  ;;  %v1401_v23 = vld [vmem:[%s1906_s8 + $0x84] sm:$0xf0] }
  0x6a   : > { %v1404_v30 = vor.u32 %v1642_v22, %v1401_v23  ;;  %v1448_v23 = vor.u32 %v1655_v15, %v1447_v14 }
  0x6c   : > { %835 = vmatmul.bf16.gmra.mxu0 %v1388_v16  ;;  %964 = vmatmul.bf16.vlgmr.msrb.gmra.mxu3 %v1488_v17  ;;  %v1654_v16 = vld [vmem:[%s1906_s8 + $0xdc] sm:$0xf]  ;;  %v1503_v17 = vld [vmem:[%s1906_s8 + $0x140] sm:$0xf] }
  0x6d   : > { %924 = vmatmul.bf16.gmra.mxu1 %v1392_v18  ;;  %v1668_v18 = vld [vmem:[%s1906_s8 + $0x148] sm:$0xf0] }
  0x6e   : > { %1013 = vmatmul.bf16.gmra.mxu2 %v1396_v19  ;;  %v1449_v19 = vld [vmem:[%s1906_s8 + $0xe4] sm:$0xf0]  ;;  %v1504_v26 = vor.u32 %v1668_v18, %v1503_v17 }
  0x7c   : > { %840 = vmatmul.bf16.gmra.mxu0 %v1400_v28  ;;  %969 = vmatmul.bf16.gmra.mxu3 %v1500_v29  ;;  %v1452_v29 = vor.u32 %v1654_v16, %v1449_v19 }
  0x7d   : > { %929 = vmatmul.bf16.gmra.mxu1 %v1404_v30  ;;  %v1456_v30 = vor.u32 %v1656_v21, %v1455_v20 }
  0x7e   : > { %1018 = vmatmul.bf16.gmra.mxu2 %v1408_v31 }
  0x8c   : > { %845 = vmatmul.bf16.gmra.mxu0 %v1412_v40  ;;  %974 = vmatmul.bf16.gmra.mxu3 %v1512_v41  ;;  %v1459_v40 = vld [vmem:[%s1906_s8 + $0xf0] sm:$0xf]  ;;  %v1658_v41 = vld [vmem:[%s1906_s8 + $0xf8] sm:$0xf0] }
  0x8d   : > { %934 = vmatmul.bf16.gmra.mxu1 %v1416_v42  ;;  %v1657_v42 = vld [vmem:[%s1906_s8 + $0xf4] sm:$0xf]  ;;  %v1460_v51 = vor.u32 %v1658_v41, %v1459_v40 }
  0x8e   : > { %1023 = vmatmul.bf16.gmra.mxu2 %v1420_v43  ;;  %v1515_v43 = vld [vmem:[%s1906_s8 + $0x158] sm:$0xf] }
  0x9c   : > { %850 = vmatmul.bf16.gmra.mxu0 %v1424_v52  ;;  %979 = vmatmul.bf16.gmra.mxu3 %v1524_v53  ;;  %v1516_v52 = vor.u32 %v1671_v44, %v1515_v43 }
  0x9d   : > { %939 = vmatmul.bf16.gmra.mxu1 %v1428_v54 }
  0x9e   : > { %1028 = vmatmul.bf16.gmra.mxu2 %v1432_v55  ;;  %v1464_v55 = vor.u32 %v1657_v42, %v1461_v45 }
  0xa9   : > { %v816_v2 = vpop.f32.mrf.mxu0 }
  0xaa   : > { %v905_v5 = vpop.f32.mrf.mxu1 }
  0xab   : > { %v906_v6 = vadd.f32 %v905_v5, %v816_v2  ;;  %v1471_v2 = vld [vmem:[%s1906_s8 + $0x108] sm:$0xf]  ;;  %v1527_v5 = vld [vmem:[%s1906_s8 + $0x170] sm:$0xf] }
  0xac   : > { %855 = vmatmul.bf16.gmra.mxu0 %v1436_v0  ;;  %1053 = vmatmul.bf16.vlgmr.msra.gmra.mxu3 %v1492_v1 }
  0xad   : > { %944 = vmatmul.bf16.gmra.mxu1 %v1440_v3  ;;  %v1661_v3 = vld [vmem:[%s1906_s8 + $0x110] sm:$0xf0] }
  0xae   : > { %1033 = vmatmul.bf16.gmra.mxu2 %v1444_v4  ;;  %v1660_v4 = vld [vmem:[%s1906_s8 + $0x10c] sm:$0xf]  ;;  %v1472_v15 = vor.u32 %v1661_v3, %v1471_v2 }
  0xaf   : > { %v2014_v7 = vpop.f32.mrf.mxu3 }
  0xb1   : > { %v994_v9 = vpop.f32.mrf.mxu2  ;;  %v818_v11 = vpop.f32.mrf.mxu0 }
  0xb2   : > { %v995_v10 = vadd.f32 %v994_v9, %v906_v6  ;;  %v907_v12 = vpop.f32.mrf.mxu1  ;;  %v1674_v6 = vld [vmem:[%s1906_s8 + $0x178] sm:$0xf0]  ;;  %v1473_v9 = vld [vmem:[%s1906_s8 + $0x114] sm:$0xf0] }
  0xb3   : > { %v908_v22 = vadd.f32 %v907_v12, %v818_v11  ;;  %v1662_v11 = vld [vmem:[%s1906_s8 + $0x118] sm:$0xf0]  ;;  %v1528_v16 = vor.u32 %v1674_v6, %v1527_v5  ;;  %v1476_v19 = vor.u32 %v1660_v4, %v1473_v9 }
  0xb4   : > { %v1177_v13 = vadd.f32 %v2020_v8, %v995_v10  ;;  %v1479_v10 = vld [vmem:[%s1906_s8 + $0x110] sm:$0xf] }
  0xb5   : > { %v1480_v20 = vor.u32 %v1662_v11, %v1479_v10 }
  0xb6   : > { %1209 = vst [vmem:[%s2025_s27] sm:$0xff] %v1177_v13 }
  0xb7   : > { %v2037_v24 = vpop.f32.mrf.mxu3 }
  0xb9   : > { %v996_v25 = vpop.f32.mrf.mxu2  ;;  %v821_v28 = vpop.f32.mrf.mxu0 }
  0xba   : > { %v997_v27 = vadd.f32 %v996_v25, %v908_v22  ;;  %v910_v31 = vpop.f32.mrf.mxu1 }
  0xbb   : > { %v911_v33 = vadd.f32 %v910_v31, %v821_v28 }
  0xbc   : > { %v1178_v32 = vadd.f32 %v2020_v8, %v997_v27  ;;  %860 = vmatmul.bf16.gmra.mxu0 %v1448_v23  ;;  %1058 = vmatmul.bf16.gmra.mxu3 %v1504_v26 }
  0xbd   : > { %949 = vmatmul.bf16.gmra.mxu1 %v1452_v29 }
  0xbe   : > { %1210 = vst [vmem:[%s2025_s27 + $0x8] sm:$0xff] %v1178_v32  ;;  %1038 = vmatmul.bf16.gmra.mxu2 %v1456_v30 }
  0xbf   : > { %v2041_v34 = vpop.f32.mrf.mxu3 }
  0xc1   : > { %v999_v35 = vpop.f32.mrf.mxu2  ;;  %v823_v37 = vpop.f32.mrf.mxu0 }
  0xc2   : > { %v1000_v36 = vadd.f32 %v999_v35, %v911_v33  ;;  %v912_v38 = vpop.f32.mrf.mxu1 }
  0xc3   : > { %v913_v48 = vadd.f32 %v912_v38, %v823_v37 }
  0xc4   : > { %v1179_v39 = vadd.f32 %v2020_v8, %v1000_v36 }
  0xc6   : > { %1211 = vst [vmem:[%s2025_s27 + $0x10] sm:$0xff] %v1179_v39 }
  0xc7   : > { %v2053_v49 = vpop.f32.mrf.mxu3 }
  0xc9   : > { %v1001_v50 = vpop.f32.mrf.mxu2  ;;  %v826_v54 = vpop.f32.mrf.mxu0 }
  0xca   : > { %v1002_v53 = vadd.f32 %v1001_v50, %v913_v48  ;;  %v915_v57 = vpop.f32.mrf.mxu1 }
  0xcb   : > { %v916_v59 = vadd.f32 %v915_v57, %v826_v54 }
  0xcc   : > { %v1180_v58 = vadd.f32 %v2020_v8, %v1002_v53  ;;  %865 = vmatmul.bf16.gmra.mxu0 %v1460_v51  ;;  %1063 = vmatmul.bf16.gmra.mxu3 %v1516_v52 }
  0xcd   : > { %954 = vmatmul.bf16.gmra.mxu1 %v1464_v55 }
  0xce   : > { %1212 = vst [vmem:[%s2025_s27 + $0x18] sm:$0xff] %v1180_v58  ;;  %1043 = vmatmul.bf16.gmra.mxu2 %v1468_v56 }
  0xcf   : > { %v2057_v60 = vpop.f32.mrf.mxu3 }
  0xd1   : > { %v1004_v61 = vpop.f32.mrf.mxu2  ;;  %v828_v63 = vpop.f32.mrf.mxu0 }
  0xd2   : > { %v1005_v62 = vadd.f32 %v1004_v61, %v916_v59  ;;  %v917_v0 = vpop.f32.mrf.mxu1 }
  0xd3   : > { %v918_v12 = vadd.f32 %v917_v0, %v828_v63 }
  0xd4   : > { %v1181_v1 = vadd.f32 %v2020_v8, %v1005_v62 }
  0xd6   : > { %1213 = vst [vmem:[%s2025_s27 + $0x20] sm:$0xff] %v1181_v1 }
  0xd7   : > { %v2069_v13 = vpop.f32.mrf.mxu3 }
  0xd9   : > { %v1006_v14 = vpop.f32.mrf.mxu2  ;;  %v831_v18 = vpop.f32.mrf.mxu0 }
  0xda   : > { %v1007_v17 = vadd.f32 %v1006_v14, %v918_v12  ;;  %v920_v21 = vpop.f32.mrf.mxu1 }
  0xdb   : > { %v921_v25 = vadd.f32 %v920_v21, %v831_v18 }
  0xdc   : > { %v1182_v22 = vadd.f32 %v2020_v8, %v1007_v17  ;;  %870 = vmatmul.bf16.gmra.mxu0 %v1472_v15  ;;  %1068 = vmatmul.bf16.gmra.mxu3 %v1528_v16 }
  0xdd   : > { %959 = vmatmul.bf16.gmra.mxu1 %v1476_v19 }
  0xde   : > { %1214 = vst [vmem:[%s2025_s27 + $0x28] sm:$0xff] %v1182_v22  ;;  %1048 = vmatmul.bf16.gmra.mxu2 %v1480_v20 }
  0xdf   : > { %v2073_v23 = vpop.f32.mrf.mxu3 }
  0xe1   : > { %v1009_v26 = vpop.f32.mrf.mxu2  ;;  %v833_v28 = vpop.f32.mrf.mxu0 }
  0xe2   : > { %v1010_v27 = vadd.f32 %v1009_v26, %v921_v25  ;;  %v922_v29 = vpop.f32.mrf.mxu1 }
  0xe3   : > { %v923_v31 = vadd.f32 %v922_v29, %v833_v28 }
  0xe4   : > { %v1183_v30 = vadd.f32 %v2020_v8, %v1010_v27 }
  0xe6   : > { %1215 = vst [vmem:[%s2025_s27 + $0x30] sm:$0xff] %v1183_v30 }
  0xe7   : > { %v2077_v32 = vpop.f32.mrf.mxu3 }
  0xe9   : > { %v1011_v33 = vpop.f32.mrf.mxu2  ;;  %v836_v36 = vpop.f32.mrf.mxu0 }
  0xea   : > { %v1012_v35 = vadd.f32 %v1011_v33, %v923_v31  ;;  %v925_v37 = vpop.f32.mrf.mxu1 }
  0xeb   : > { %v926_v39 = vadd.f32 %v925_v37, %v836_v36 }
  0xec   : > { %v1184_v38 = vadd.f32 %v2020_v8, %v1012_v35 }
  0xee   : > { %1216 = vst [vmem:[%s2025_s27 + $0x38] sm:$0xff] %v1184_v38 }
  0xef   : > { %v2081_v40 = vpop.f32.mrf.mxu3 }
  0xf1   : > { %v1014_v41 = vpop.f32.mrf.mxu2  ;;  %v838_v43 = vpop.f32.mrf.mxu0 }
  0xf2   : > { %v1015_v42 = vadd.f32 %v1014_v41, %v926_v39  ;;  %v927_v44 = vpop.f32.mrf.mxu1 }
  0xf3   : > { %v928_v46 = vadd.f32 %v927_v44, %v838_v43 }
  0xf4   : > { %v1185_v45 = vadd.f32 %v2020_v8, %v1015_v42  ;;  %v966_v42 = vadd.f32 %v2081_v40, %v2014_v7 }
  0xf6   : > { %1217 = vst [vmem:[%s2025_s27 + $0x40] sm:$0xff] %v1185_v45 }
  0xf7   : > { %v2085_v47 = vpop.f32.mrf.mxu3 }
  0xf9   : > { %v1016_v48 = vpop.f32.mrf.mxu2  ;;  %v841_v51 = vpop.f32.mrf.mxu0 }
  0xfa   : > { %v1017_v50 = vadd.f32 %v1016_v48, %v928_v46  ;;  %v930_v52 = vpop.f32.mrf.mxu1 }
  0xfb   : > { %v931_v54 = vadd.f32 %v930_v52, %v841_v51 }
  0xfc   : > { %v1186_v53 = vadd.f32 %v2020_v8, %v1017_v50 }
  0xfe   : > { %1218 = vst [vmem:[%s2025_s27 + $0x48] sm:$0xff] %v1186_v53  ;;  %v968_v53 = vadd.f32 %v2085_v47, %v2037_v24 }
  0xff   : > { %v2089_v55 = vpop.f32.mrf.mxu3 }
 0x101   : > { %v1019_v56 = vpop.f32.mrf.mxu2  ;;  %v843_v58 = vpop.f32.mrf.mxu0 }
 0x102   : > { %v1020_v57 = vadd.f32 %v1019_v56, %v931_v54  ;;  %v932_v59 = vpop.f32.mrf.mxu1 }
 0x103   : > { %v933_v62 = vadd.f32 %v932_v59, %v843_v58 }
 0x104   : > { %v1187_v61 = vadd.f32 %v2020_v8, %v1020_v57 }
 0x106   : > { %1219 = vst [vmem:[%s2025_s27 + $0x50] sm:$0xff] %v1187_v61 }
 0x107   : > { %v2093_v63 = vpop.f32.mrf.mxu3 }
 0x109   : > { %v1021_v0 = vpop.f32.mrf.mxu2  ;;  %v846_v2 = vpop.f32.mrf.mxu0 }
 0x10a   : > { %v1022_v1 = vadd.f32 %v1021_v0, %v933_v62  ;;  %v935_v3 = vpop.f32.mrf.mxu1 }
 0x10b   : > { %v936_v5 = vadd.f32 %v935_v3, %v846_v2 }
 0x10c   : > { %v1188_v4 = vadd.f32 %v2020_v8, %v1022_v1  ;;  %v971_v1 = vadd.f32 %v2089_v55, %v2041_v34 }
 0x10e   : > { %1220 = vst [vmem:[%s2025_s27 + $0x58] sm:$0xff] %v1188_v4 }
 0x10f   : > { %v2097_v6 = vpop.f32.mrf.mxu3 }
 0x111   : > { %v1024_v9 = vpop.f32.mrf.mxu2  ;;  %v848_v11 = vpop.f32.mrf.mxu0 }
 0x112   : > { %v1025_v10 = vadd.f32 %v1024_v9, %v936_v5  ;;  %v937_v12 = vpop.f32.mrf.mxu1 }
 0x113   : > { %v938_v15 = vadd.f32 %v937_v12, %v848_v11  ;;  %v973_v11 = vadd.f32 %v2093_v63, %v2053_v49 }
 0x114   : > { %v1189_v14 = vadd.f32 %v2020_v8, %v1025_v10 }
 0x116   : > { %1221 = vst [vmem:[%s2025_s27 + $0x60] sm:$0xff] %v1189_v14 }
 0x117   : > { %v2101_v16 = vpop.f32.mrf.mxu3 }
 0x119   : > { %v1026_v17 = vpop.f32.mrf.mxu2  ;;  %v851_v19 = vpop.f32.mrf.mxu0 }
 0x11a   : > { %v1027_v18 = vadd.f32 %v1026_v17, %v938_v15  ;;  %v940_v20 = vpop.f32.mrf.mxu1 }
 0x11b   : > { %v941_v22 = vadd.f32 %v940_v20, %v851_v19 }
 0x11c   : > { %v1190_v21 = vadd.f32 %v2020_v8, %v1027_v18 }
 0x11e   : > { %1222 = vst [vmem:[%s2025_s27 + $0x68] sm:$0xff] %v1190_v21 }
 0x11f   : > { %v2105_v25 = vpop.f32.mrf.mxu3 }
 0x121   : > { %v1029_v26 = vpop.f32.mrf.mxu2  ;;  %v853_v28 = vpop.f32.mrf.mxu0 }
 0x122   : > { %v1030_v27 = vadd.f32 %v1029_v26, %v941_v22  ;;  %v942_v29 = vpop.f32.mrf.mxu1  ;;  %v976_v22 = vadd.f32 %v2097_v6, %v2057_v60 }
 0x123   : > { %v943_v31 = vadd.f32 %v942_v29, %v853_v28 }
 0x124   : > { %v1191_v30 = vadd.f32 %v2020_v8, %v1030_v27 }
 0x126   : > { %1223 = vst [vmem:[%s2025_s27 + $0x70] sm:$0xff] %v1191_v30 }
 0x127   : > { %v2109_v33 = vpop.f32.mrf.mxu3 }
 0x129   : > { %v1031_v35 = vpop.f32.mrf.mxu2  ;;  %v856_v37 = vpop.f32.mrf.mxu0 }
 0x12a   : > { %v1032_v36 = vadd.f32 %v1031_v35, %v943_v31  ;;  %v945_v38 = vpop.f32.mrf.mxu1  ;;  %v978_v35 = vadd.f32 %v2101_v16, %v2069_v13 }
 0x12b   : > { %v946_v41 = vadd.f32 %v945_v38, %v856_v37 }
 0x12c   : > { %v1192_v39 = vadd.f32 %v2020_v8, %v1032_v36 }
 0x12e   : > { %1224 = vst [vmem:[%s2025_s27 + $0x78] sm:$0xff] %v1192_v39 }
 0x12f   : > { %v1054_v43 = vpop.f32.mrf.mxu3 }
 0x130   : > { %v1055_v45 = vadd.f32 %v1054_v43, %v966_v42 }
 0x131   : > { %v1034_v44 = vpop.f32.mrf.mxu2  ;;  %v858_v48 = vpop.f32.mrf.mxu0 }
 0x132   : > { %v1035_v46 = vadd.f32 %v1034_v44, %v946_v41  ;;  %v1201_v50 = vadd.f32 %v2020_v8, %v1055_v45  ;;  %v947_v51 = vpop.f32.mrf.mxu1  ;;  %v981_v45 = vadd.f32 %v2105_v25, %v2073_v23 }
 0x133   : > { %v948_v54 = vadd.f32 %v947_v51, %v858_v48 }
 0x134   : > { %v1193_v52 = vadd.f32 %v2020_v8, %v1035_v46  ;;  %1233 = vst [vmem:[%s2025_s27 + $0xc0] sm:$0xff] %v1201_v50 }
 0x136   : > { %1225 = vst [vmem:[%s2025_s27 + $0x80] sm:$0xff] %v1193_v52 }
 0x137   : > { %v1056_v56 = vpop.f32.mrf.mxu3 }
 0x138   : > { %v1057_v40 = vadd.f32 %v1056_v56, %v968_v53 }
 0x139   : > { %v1036_v7 = vpop.f32.mrf.mxu2  ;;  %v861_v58 = vpop.f32.mrf.mxu0 }
 0x13a   : > { %v1037_v57 = vadd.f32 %v1036_v7, %v948_v54  ;;  %v1202_v59 = vadd.f32 %v2020_v8, %v1057_v40  ;;  %v950_v61 = vpop.f32.mrf.mxu1  ;;  %v983_v54 = vadd.f32 %v2109_v33, %v2077_v32 }
 0x13b   : > { %v951_v0 = vadd.f32 %v950_v61, %v861_v58 }
 0x13c   : > { %v1194_v62 = vadd.f32 %v2020_v8, %v1037_v57  ;;  %1234 = vst [vmem:[%s2025_s27 + $0xc8] sm:$0xff] %v1202_v59 }
 0x13e   : > { %1226 = vst [vmem:[%s2025_s27 + $0x88] sm:$0xff] %v1194_v62 }
 0x13f   : > { %v1059_v24 = vpop.f32.mrf.mxu3 }
 0x140   : > { %v1060_v2 = vadd.f32 %v1059_v24, %v971_v1 }
 0x141   : > { %v1039_v47 = vpop.f32.mrf.mxu2  ;;  %v863_v4 = vpop.f32.mrf.mxu0 }
 0x142   : > { %v1040_v3 = vadd.f32 %v1039_v47, %v951_v0  ;;  %v1203_v5 = vadd.f32 %v2020_v8, %v1060_v2  ;;  %v952_v9 = vpop.f32.mrf.mxu1 }
 0x143   : > { %v953_v12 = vadd.f32 %v952_v9, %v863_v4 }
 0x144   : > { %v1195_v10 = vadd.f32 %v2020_v8, %v1040_v3  ;;  %1235 = vst [vmem:[%s2025_s27 + $0xd0] sm:$0xff] %v1203_v5 }
 0x146   : > { %1227 = vst [vmem:[%s2025_s27 + $0x90] sm:$0xff] %v1195_v10 }
 0x147   : > { %v1061_v14 = vpop.f32.mrf.mxu3 }
 0x148   : > { %v1062_v55 = vadd.f32 %v1061_v14, %v973_v11 }
 0x149   : > { %v1041_v34 = vpop.f32.mrf.mxu2  ;;  %v866_v17 = vpop.f32.mrf.mxu0 }
 0x14a   : > { %v1042_v15 = vadd.f32 %v1041_v34, %v953_v12  ;;  %v1204_v18 = vadd.f32 %v2020_v8, %v1062_v55  ;;  %v955_v19 = vpop.f32.mrf.mxu1 }
 0x14b   : > { %v956_v21 = vadd.f32 %v955_v19, %v866_v17 }
 0x14c   : > { %v1196_v20 = vadd.f32 %v2020_v8, %v1042_v15  ;;  %1236 = vst [vmem:[%s2025_s27 + $0xd8] sm:$0xff] %v1204_v18 }
 0x14e   : > { %1228 = vst [vmem:[%s2025_s27 + $0x98] sm:$0xff] %v1196_v20 }
 0x14f   : > { %v1064_v49 = vpop.f32.mrf.mxu3 }
 0x150   : > { %v1065_v26 = vadd.f32 %v1064_v49, %v976_v22 }
 0x151   : > { %v1044_v63 = vpop.f32.mrf.mxu2  ;;  %v868_v28 = vpop.f32.mrf.mxu0 }
 0x152   : > { %v1045_v27 = vadd.f32 %v1044_v63, %v956_v21  ;;  %v1205_v29 = vadd.f32 %v2020_v8, %v1065_v26  ;;  %v957_v30 = vpop.f32.mrf.mxu1 }
 0x153   : > { %v958_v36 = vadd.f32 %v957_v30, %v868_v28 }
 0x154   : > { %v1197_v31 = vadd.f32 %v2020_v8, %v1045_v27  ;;  %1237 = vst [vmem:[%s2025_s27 + $0xe0] sm:$0xff] %v1205_v29 }
 0x156   : > { %1229 = vst [vmem:[%s2025_s27 + $0xa0] sm:$0xff] %v1197_v31 }
 0x157   : > { %v1066_v37 = vpop.f32.mrf.mxu3 }
 0x158   : > { %v1067_v6 = vadd.f32 %v1066_v37, %v978_v35 }
 0x159   : > { %v1046_v60 = vpop.f32.mrf.mxu2  ;;  %v871_v41 = vpop.f32.mrf.mxu0 }
 0x15a   : > { %v1047_v38 = vadd.f32 %v1046_v60, %v958_v36  ;;  %v1206_v39 = vadd.f32 %v2020_v8, %v1067_v6  ;;  %v960_v42 = vpop.f32.mrf.mxu1 }
 0x15b   : > { %v961_v44 = vadd.f32 %v960_v42, %v871_v41 }
 0x15c   : > { %v1198_v43 = vadd.f32 %v2020_v8, %v1047_v38  ;;  %1238 = vst [vmem:[%s2025_s27 + $0xe8] sm:$0xff] %v1206_v39 }
 0x15e   : > { %1230 = vst [vmem:[%s2025_s27 + $0xa8] sm:$0xff] %v1198_v43 }
 0x15f   : > { %v1069_v13 = vpop.f32.mrf.mxu3 }
 0x160   : > { %v1070_v46 = vadd.f32 %v1069_v13, %v981_v45 }
 0x161   : > { %v1049_v16 = vpop.f32.mrf.mxu2  ;;  %v873_v52 = vpop.f32.mrf.mxu0 }
 0x162   : > { %v1050_v48 = vadd.f32 %v1049_v16, %v961_v44  ;;  %v1207_v50 = vadd.f32 %v2020_v8, %v1070_v46  ;;  %v962_v53 = vpop.f32.mrf.mxu1 }
 0x163   : > { %v963_v56 = vadd.f32 %v962_v53, %v873_v52 }
 0x164   : > { %v1199_v51 = vadd.f32 %v2020_v8, %v1050_v48  ;;  %1239 = vst [vmem:[%s2025_s27 + $0xf0] sm:$0xff] %v1207_v50 }
 0x166   : > { %1231 = vst [vmem:[%s2025_s27 + $0xb0] sm:$0xff] %v1199_v51 }
 0x167   : > { %v1071_v7 = vpop.f32.mrf.mxu3 }
 0x168   : > { %v1072_v25 = vadd.f32 %v1071_v7, %v983_v54 }
 0x169   : > { %v1051_v23 = vpop.f32.mrf.mxu2 }
 0x16a   : > { %v1052_v40 = vadd.f32 %v1051_v23, %v963_v56  ;;  %v1208_v57 = vadd.f32 %v2020_v8, %v1072_v25 }
 0x16c   : > { %v1200_v58 = vadd.f32 %v2020_v8, %v1052_v40  ;;  %1240 = vst [vmem:[%s2025_s27 + $0xf8] sm:$0xff] %v1208_v57 }
 0x16e   : > { %1232 = vst [vmem:[%s2025_s27 + $0xb8] sm:$0xff] %v1200_v58 }
 0x16f PF: > { %s13_s14 = sadd.s32 1, %s1771_s14   ;;  %s2174_s12 = smov %s1767_s13 }
 0x170   : > { %p10_p5 = scmp.ge.s32.totalorder %s13_s14, 4   ;;  %s2175_s13 = smov %s2177_s15 }
 0x172   :  { %12 = sbr.rel (!%p10_p5) target bundleno = 2 (0x2), region = 73 }

</bundles_post_ra>
